<compile_context>
chip_gen: v7x
topology: tpu7x:2x2x1
jax: 0.10.0
libtpu: 0.0.40
codegen_flags: <defaults>
</compile_context>

<pallas_src>
import functools
import math

import jax
import jax.numpy as jnp
import numpy as np
from jax.experimental import pallas as pl
from jax.experimental.pallas import tpu as pltpu

_NEG_INF = -1e30
_BF16 = jnp.bfloat16


# ----------------------------- in-kernel math -----------------------------

def _gelu(x):
    # tanh-approximate GELU (goes to the EUP slot; abs err vs exact erf ~1e-3).
    c = 0.7978845608028654  # sqrt(2/pi)
    return 0.5 * x * (1.0 + jnp.tanh(c * (x + 0.044715 * x * x * x)))


def _layernorm(x, gamma, beta, eps=1e-5):
    mu = jnp.mean(x, axis=-1, keepdims=True)
    var = jnp.mean((x - mu) ** 2, axis=-1, keepdims=True)
    return (x - mu) * jax.lax.rsqrt(var + eps) * gamma + beta


# ------------------------------- kernels ----------------------------------

def _conv1_gelu_kernel(xp_ref, w_ref, b_ref, o_ref, *, lout):
    # conv1 (k=3, pad=1, stride=1) as 3 shifted bf16 matmuls, then GELU.
    xp = xp_ref[0]                                   # (lout+2, n_mels) bf16
    acc = jnp.dot(xp[0:lout], w_ref[0], preferred_element_type=jnp.float32)
    acc = acc + jnp.dot(xp[1:lout + 1], w_ref[1], preferred_element_type=jnp.float32)
    acc = acc + jnp.dot(xp[2:lout + 2], w_ref[2], preferred_element_type=jnp.float32)
    o_ref[0] = _gelu(acc + b_ref[...]).astype(o_ref.dtype)


def _conv2_pos_kernel(e_ref, od_ref, w_ref, b_ref, pe_ref, o_ref, *,
                      valid_len, hidden):
    # conv2 (k=3, pad=1, stride=2): out[j] = xp[2j]W0 + xp[2j+1]W1 + xp[2j+2]W2
    # with xp split into even (e) / odd (od) planes in the wrapper.
    # Padded frames (rows >= valid_len) are zeroed (F.pad value=0), then the
    # sinusoidal positional embedding is added to ALL rows (matches reference).
    e = e_ref[0]                                     # (hidden+1, C) bf16
    od = od_ref[0]                                   # (hidden,   C) bf16
    acc = jnp.dot(e[0:hidden], w_ref[0], preferred_element_type=jnp.float32)
    acc = acc + jnp.dot(od[0:hidden], w_ref[1], preferred_element_type=jnp.float32)
    acc = acc + jnp.dot(e[1:hidden + 1], w_ref[2], preferred_element_type=jnp.float32)
    y = acc + b_ref[...]
    rows = jax.lax.broadcasted_iota(jnp.int32, y.shape, 0)
    y = jnp.where(rows < valid_len, y, 0.0)
    o_ref[0] = y + pe_ref[...]


def _block_kernel(x_ref, m_ref,
                  g1_ref, be1_ref,
                  wq_ref, bq_ref, wk_ref, bk_ref, wv_ref, bv_ref,
                  wo_ref, bo_ref,
                  g2_ref, be2_ref,
                  wf1_ref, bf1_ref, wf2_ref, bf2_ref,
                  *rest, n_head):
    # One pre-LN EncoderAttentionBlock for a single batch element: (T, C).
    # Optionally fuses the encoder's final LayerNorm (last block only).
    if len(rest) == 3:
        gf_ref, bf_ref, o_ref = rest
    else:
        (o_ref,) = rest
        gf_ref = bf_ref = None

    x = x_ref[0]                                     # (T, C) f32
    T, C = x.shape
    hs = C // n_head
    scale = 1.0 / math.sqrt(hs)                      # SDPA default scale
    # key-padding mask (True=valid) -> additive bias over keys (f32)
    mask_bias = jnp.where(m_ref[0] > 0.5, 0.0, _NEG_INF)     # (1, T)

    # ---- ln1 + multi-head self-attention + residual ----
    xn = _layernorm(x, g1_ref[...], be1_ref[...]).astype(_BF16)
    y = jnp.zeros((T, C), jnp.float32)
    for h in range(n_head):                          # static unroll
        qh = (jnp.dot(xn, wq_ref[h], preferred_element_type=jnp.float32)
              + bq_ref[h]) * scale                   # scale folded into q
        kh = jnp.dot(xn, wk_ref[h], preferred_element_type=jnp.float32) + bk_ref[h]
        vh = (jnp.dot(xn, wv_ref[h], preferred_element_type=jnp.float32)
              + bv_ref[h]).astype(_BF16)
        s = jax.lax.dot_general(qh.astype(_BF16), kh.astype(_BF16),
                                (((1,), (1,)), ((), ())),
                                preferred_element_type=jnp.float32)
        s = s + mask_bias                            # f32 softmax
        s = s - jnp.max(s, axis=-1, keepdims=True)
        e = jnp.exp(s)
        p = e * pl.reciprocal(jnp.sum(e, axis=-1, keepdims=True), approx=True)
        ctx = jnp.dot(p.astype(_BF16), vh, preferred_element_type=jnp.float32)
        # accumulate output projection per head -> no lane-axis concat
        y = y + jnp.dot(ctx.astype(_BF16), wo_ref[h],
                        preferred_element_type=jnp.float32)
    x = x + y + bo_ref[...]

    # ---- ln2 + MLP (Linear -> GELU -> Linear) + residual ----
    xn2 = _layernorm(x, g2_ref[...], be2_ref[...]).astype(_BF16)
    h1 = _gelu(jnp.dot(xn2, wf1_ref[...],
                       preferred_element_type=jnp.float32) + bf1_ref[...])
    h2 = jnp.dot(h1.astype(_BF16), wf2_ref[...],
                 preferred_element_type=jnp.float32) + bf2_ref[...]
    out = x + h2

    if gf_ref is not None:                           # fused final LayerNorm
        out = _layernorm(out, gf_ref[...], bf_ref[...])
    o_ref[0] = out


def _final_ln_kernel(x_ref, g_ref, b_ref, o_ref):
    # Only used if there are zero transformer blocks.
    o_ref[0] = _layernorm(x_ref[0], g_ref[...], b_ref[...])


# ------------------------------ glue / specs -------------------------------

def _batched_spec(shape):
    nd = len(shape)
    return pl.BlockSpec((1,) + tuple(shape[1:]),
                        lambda b: (b,) + (0,) * (nd - 1))


def _shared_spec(shape):
    nd = len(shape)
    return pl.BlockSpec(tuple(shape), lambda b: (0,) * nd)


_CPARAMS = pltpu.CompilerParams(dimension_semantics=("parallel",),
                                vmem_limit_bytes=48 * 1024 * 1024)


def _conv_weight_taps(w):
    # torch Conv1d weight (C_out, C_in, K) -> (K, C_in, C_out) bf16 tap stack
    return jnp.transpose(w, (2, 1, 0)).astype(_BF16)


def _per_head(w, b, n_head, out_rows=False):
    # (C, C) weight -> per-head stacks, lane-dense, bf16.
    C = w.shape[0]
    hs = C // n_head
    if out_rows:   # output projection: rows indexed by (head, hs)
        return w.reshape(n_head, hs, C).astype(_BF16), None
    wh = jnp.transpose(w.reshape(C, n_head, hs), (1, 0, 2)).astype(_BF16)
    bh = b.reshape(n_head, 1, hs).astype(jnp.float32)
    return wh, bh


def sinusoids(length, channels, max_timescale=10000):
    assert channels % 2 == 0
    log_inc = np.log(max_timescale) / (channels // 2 - 1)
    inv = jnp.exp(-log_inc * jnp.arange(channels // 2, dtype=jnp.float32))
    scaled = jnp.arange(length, dtype=jnp.float32)[:, None] * inv[None, :]
    return jnp.concatenate([jnp.sin(scaled), jnp.cos(scaled)], axis=1)


# ------------------------------ forward pass -------------------------------

def encoder_forward(x, params, *, hidden, n_head):
    # x: (B, n_mels, T)  -- same NCW convention as the PyTorch Conv1d inputs.
    B, n_mels, T = x.shape
    n_embd = params["conv1_w"].shape[0]

    # time-major / channel-last, bf16 activations for the conv matmuls
    xt = jnp.transpose(x, (0, 2, 1)).astype(_BF16)            # (B, T, n_mels)

    # ---- conv1 + GELU (3 shifted matmuls, no im2col) ----
    xp1 = jnp.pad(xt, ((0, 0), (1, 1), (0, 0)))               # (B, T+2, n_mels)
    w1 = _conv_weight_taps(params["conv1_w"])                 # (3, n_mels, C)
    b1 = params["conv1_b"].reshape(1, -1)
    h1 = pl.pallas_call(
        functools.partial(_conv1_gelu_kernel, lout=T),
        out_shape=jax.ShapeDtypeStruct((B, T, n_embd), _BF16),
        grid=(B,),
        in_specs=[_batched_spec(xp1.shape), _shared_spec(w1.shape),
                  _shared_spec(b1.shape)],
        out_specs=_batched_spec((B, T, n_embd)),
        compiler_params=_CPARAMS,
    )(xp1, w1, b1)

    # ---- conv2 (stride 2) via even/odd planes + pad to `hidden` + pos emb ----
    l2 = (T - 1) // 2 + 1
    assert l2 <= hidden
    xp2 = jnp.pad(h1, ((0, 0), (1, 1), (0, 0)))               # (B, T+2, C)
    ev = xp2[:, 0::2, :][:, :hidden + 1, :]
    od = xp2[:, 1::2, :][:, :hidden, :]
    ev = jnp.pad(ev, ((0, 0), (0, hidden + 1 - ev.shape[1]), (0, 0)))
    od = jnp.pad(od, ((0, 0), (0, hidden - od.shape[1]), (0, 0)))
    w2 = _conv_weight_taps(params["conv2_w"])                 # (3, C, C)
    b2 = params["conv2_b"].reshape(1, -1)
    pos = sinusoids(hidden, n_embd).astype(jnp.float32)
    h2 = pl.pallas_call(
        functools.partial(_conv2_pos_kernel, valid_len=l2, hidden=hidden),
        out_shape=jax.ShapeDtypeStruct((B, hidden, n_embd), jnp.float32),
        grid=(B,),
        in_specs=[_batched_spec(ev.shape), _batched_spec(od.shape),
                  _shared_spec(w2.shape), _shared_spec(b2.shape),
                  _shared_spec(pos.shape)],
        out_specs=_batched_spec((B, hidden, n_embd)),
        compiler_params=_CPARAMS,
    )(ev, od, w2, b2, pos)

    # key-padding mask (True for valid frames), passed as 0/1 float
    mask = (jnp.arange(hidden) < l2).astype(jnp.float32)
    mask = jnp.broadcast_to(mask[None, None, :], (B, 1, hidden))

    # ---- transformer blocks (final LN fused into the last one) ----
    lnf_g = params["ln_g"].reshape(1, -1)
    lnf_b = params["ln_b"].reshape(1, -1)
    xcur = h2
    blocks = params["blocks"]
    for i, blk in enumerate(blocks):
        is_last = (i == len(blocks) - 1)
        wq, bq = _per_head(blk["wq"], blk["bq"], n_head)
        wk, bk = _per_head(blk["wk"], blk["bk"], n_head)
        wv, bv = _per_head(blk["wv"], blk["bv"], n_head)
        wo, _ = _per_head(blk["wo"], None, n_head, out_rows=True)
        args = [xcur, mask,
                blk["ln1_g"].reshape(1, -1), blk["ln1_b"].reshape(1, -1),
                wq, bq, wk, bk, wv, bv,
                wo, blk["bo"].reshape(1, -1),
                blk["ln2_g"].reshape(1, -1), blk["ln2_b"].reshape(1, -1),
                blk["wf1"].astype(_BF16), blk["bf1"].reshape(1, -1),
                blk["wf2"].astype(_BF16), blk["bf2"].reshape(1, -1)]
        if is_last:
            args += [lnf_g, lnf_b]
        in_specs = [_batched_spec(xcur.shape), _batched_spec(mask.shape)]
        in_specs += [_shared_spec(a.shape) for a in args[2:]]
        xcur = pl.pallas_call(
            functools.partial(_block_kernel, n_head=n_head),
            out_shape=jax.ShapeDtypeStruct((B, hidden, n_embd), jnp.float32),
            grid=(B,),
            in_specs=in_specs,
            out_specs=_batched_spec((B, hidden, n_embd)),
            compiler_params=_CPARAMS,
        )(*args)

    if not blocks:   # degenerate case: standalone final LayerNorm
        xcur = pl.pallas_call(
            _final_ln_kernel,
            out_shape=jax.ShapeDtypeStruct((B, hidden, n_embd), jnp.float32),
            grid=(B,),
            in_specs=[_batched_spec(xcur.shape),
                      _shared_spec(lnf_g.shape), _shared_spec(lnf_b.shape)],
            out_specs=_batched_spec((B, hidden, n_embd)),
            compiler_params=_CPARAMS,
        )(xcur, lnf_g, lnf_b)
    return xcur


# --------------------------- deterministic params --------------------------

def init_params(key, n_mels, n_embd, n_layer):
    keys = jax.random.split(key, 2 + n_layer)

    def lin(k, fan_in, fan_out):
        kw, kb = jax.random.split(k)
        bound = 1.0 / math.sqrt(fan_in)
        w = jax.random.uniform(kw, (fan_in, fan_out), jnp.float32, -bound, bound)
        b = jax.random.uniform(kb, (fan_out,), jnp.float32, -bound, bound)
        return w, b

    def conv(k, c_in, c_out, ksz):
        kw, kb = jax.random.split(k)
        bound = 1.0 / math.sqrt(c_in * ksz)
        w = jax.random.uniform(kw, (c_out, c_in, ksz), jnp.float32, -bound, bound)
        b = jax.random.uniform(kb, (c_out,), jnp.float32, -bound, bound)
        return w, b

    p = {}
    p["conv1_w"], p["conv1_b"] = conv(keys[0], n_mels, n_embd, 3)
    p["conv2_w"], p["conv2_b"] = conv(keys[1], n_embd, n_embd, 3)
    blocks = []
    for i in range(n_layer):
        bk = jax.random.split(keys[2 + i], 6)
        wq, bq = lin(bk[0], n_embd, n_embd)
        wk, bkb = lin(bk[1], n_embd, n_embd)
        wv, bv = lin(bk[2], n_embd, n_embd)
        wo, bo = lin(bk[3], n_embd, n_embd)
        wf1, bf1 = lin(bk[4], n_embd, 4 * n_embd)
        wf2, bf2 = lin(bk[5], 4 * n_embd, n_embd)
        blocks.append(dict(
            ln1_g=jnp.ones((n_embd,), jnp.float32),
            ln1_b=jnp.zeros((n_embd,), jnp.float32),
            wq=wq, bq=bq, wk=wk, bk=bkb, wv=wv, bv=bv, wo=wo, bo=bo,
            ln2_g=jnp.ones((n_embd,), jnp.float32),
            ln2_b=jnp.zeros((n_embd,), jnp.float32),
            wf1=wf1, bf1=bf1, wf2=wf2, bf2=bf2))
    p["blocks"] = blocks
    p["ln_g"] = jnp.ones((n_embd,), jnp.float32)
    p["ln_b"] = jnp.zeros((n_embd,), jnp.float32)
    return p


if __name__ == "__main__":
    key = jax.random.PRNGKey(0)
    B, n_mels, T_in = 2, 4, 14          # conv2 output length = 7 -> padded to hidden=8
    hidden, n_layer, n_embd, n_head = 8, 2, 32, 4

    kp, kx = jax.random.split(key)
    params = init_params(kp, n_mels, n_embd, n_layer)
    x = jax.random.normal(kx, (B, n_mels, T_in), jnp.float32)

    out = encoder_forward(x, params, hidden=hidden, n_head=n_head)
    out = jax.block_until_ready(out)
    assert out.shape == (B, hidden, n_embd)
    assert bool(jnp.all(jnp.isfinite(out)))
    print("KERNEL_OK")
</pallas_src>

<mosaic_0001>
module attributes {stable_mosaic.version = 11 : i64} {
  func.func @_conv1_gelu_kernel(%arg0: i32, %arg1: memref<1x16x4xbf16, #tpu.memory_space<vmem>>, %arg2: memref<3x4x32xbf16, #tpu.memory_space<vmem>>, %arg3: memref<1x32xf32, #tpu.memory_space<vmem>>, %arg4: memref<1x14x32xbf16, #tpu.memory_space<vmem>>) attributes {dimension_semantics = [#tpu.dimension_semantics<parallel>], iteration_bounds = array<i64: 2>, scalar_prefetch = 0 : i64, scratch_operands = 0 : i64, tpu.core_type = #tpu.core_type<tc>, window_params = [{transform_indices = @transform_0, window_bounds = array<i64: 1, 16, 4>}, {pipeline_mode = #tpu.pipeline_mode<synchronous>, transform_indices = @transform_1, window_bounds = array<i64: 3, 4, 32>}, {pipeline_mode = #tpu.pipeline_mode<synchronous>, transform_indices = @transform_2, window_bounds = array<i64: 1, 32>}, {transform_indices = @transform_3, window_bounds = array<i64: 1, 14, 32>}]} {
    %c0 = arith.constant 0 : index
    %c0_0 = arith.constant 0 : index
    %c0_1 = arith.constant 0 : index
    %0 = vector.load %arg1[%c0, %c0_0, %c0_1] : memref<1x16x4xbf16, #tpu.memory_space<vmem>>, vector<1x16x4xbf16>
    %1 = vector.shape_cast %0 : vector<1x16x4xbf16> to vector<16x4xbf16>
    %2 = vector.extract_strided_slice %1 {offsets = [0, 0], sizes = [14, 4], strides = [1, 1]} : vector<16x4xbf16> to vector<14x4xbf16>
    %c0_2 = arith.constant 0 : index
    %c0_3 = arith.constant 0 : index
    %c0_4 = arith.constant 0 : index
    %3 = vector.load %arg2[%c0_2, %c0_3, %c0_4] : memref<3x4x32xbf16, #tpu.memory_space<vmem>>, vector<1x4x32xbf16>
    %4 = vector.shape_cast %3 : vector<1x4x32xbf16> to vector<4x32xbf16>
    %cst = arith.constant dense<0.000000e+00> : vector<14x32xf32>
    %5 = tpu.matmul %2, %4, %cst {dimension_numbers = #tpu.dot_dimension_numbers<[1], [0], [0], [1], [0, 0, 1, 1], [], []>} : vector<14x4xbf16>, vector<4x32xbf16>, vector<14x32xf32> -> vector<14x32xf32>
    %6 = vector.extract_strided_slice %1 {offsets = [1, 0], sizes = [14, 4], strides = [1, 1]} : vector<16x4xbf16> to vector<14x4xbf16>
    %c1 = arith.constant 1 : index
    %c0_5 = arith.constant 0 : index
    %c0_6 = arith.constant 0 : index
    %7 = vector.load %arg2[%c1, %c0_5, %c0_6] : memref<3x4x32xbf16, #tpu.memory_space<vmem>>, vector<1x4x32xbf16>
    %8 = vector.shape_cast %7 : vector<1x4x32xbf16> to vector<4x32xbf16>
    %cst_7 = arith.constant dense<0.000000e+00> : vector<14x32xf32>
    %9 = tpu.matmul %6, %8, %cst_7 {dimension_numbers = #tpu.dot_dimension_numbers<[1], [0], [0], [1], [0, 0, 1, 1], [], []>} : vector<14x4xbf16>, vector<4x32xbf16>, vector<14x32xf32> -> vector<14x32xf32>
    %10 = arith.addf %5, %9 : vector<14x32xf32>
    %11 = vector.extract_strided_slice %1 {offsets = [2, 0], sizes = [14, 4], strides = [1, 1]} : vector<16x4xbf16> to vector<14x4xbf16>
    %c2 = arith.constant 2 : index
    %c0_8 = arith.constant 0 : index
    %c0_9 = arith.constant 0 : index
    %12 = vector.load %arg2[%c2, %c0_8, %c0_9] : memref<3x4x32xbf16, #tpu.memory_space<vmem>>, vector<1x4x32xbf16>
    %13 = vector.shape_cast %12 : vector<1x4x32xbf16> to vector<4x32xbf16>
    %cst_10 = arith.constant dense<0.000000e+00> : vector<14x32xf32>
    %14 = tpu.matmul %11, %13, %cst_10 {dimension_numbers = #tpu.dot_dimension_numbers<[1], [0], [0], [1], [0, 0, 1, 1], [], []>} : vector<14x4xbf16>, vector<4x32xbf16>, vector<14x32xf32> -> vector<14x32xf32>
    %15 = arith.addf %10, %14 : vector<14x32xf32>
    %c0_11 = arith.constant 0 : index
    %c0_12 = arith.constant 0 : index
    %16 = vector.load %arg3[%c0_11, %c0_12] : memref<1x32xf32, #tpu.memory_space<vmem>>, vector<1x32xf32>
    %17 = vector.broadcast %16 : vector<1x32xf32> to vector<14x32xf32>
    %18 = arith.addf %15, %17 : vector<14x32xf32>
    %cst_13 = arith.constant 5.000000e-01 : f32
    %19 = vector.broadcast %cst_13 : f32 to vector<14x32xf32>
    %20 = arith.mulf %19, %18 : vector<14x32xf32>
    %cst_14 = arith.constant 4.471500e-02 : f32
    %21 = vector.broadcast %cst_14 : f32 to vector<14x32xf32>
    %22 = arith.mulf %21, %18 : vector<14x32xf32>
    %23 = arith.mulf %22, %18 : vector<14x32xf32>
    %24 = arith.mulf %23, %18 : vector<14x32xf32>
    %25 = arith.addf %18, %24 : vector<14x32xf32>
    %cst_15 = arith.constant 0.797884583 : f32
    %26 = vector.broadcast %cst_15 : f32 to vector<14x32xf32>
    %27 = arith.mulf %26, %25 : vector<14x32xf32>
    %28 = math.tanh %27 : vector<14x32xf32>
    %cst_16 = arith.constant 1.000000e+00 : f32
    %29 = vector.broadcast %cst_16 : f32 to vector<14x32xf32>
    %30 = arith.addf %29, %28 : vector<14x32xf32>
    %31 = arith.mulf %20, %30 : vector<14x32xf32>
    %32 = arith.truncf %31 : vector<14x32xf32> to vector<14x32xbf16>
    %c0_17 = arith.constant 0 : index
    %c0_18 = arith.constant 0 : index
    %c0_19 = arith.constant 0 : index
    %33 = vector.load %arg4[%c0_17, %c0_18, %c0_19] : memref<1x14x32xbf16, #tpu.memory_space<vmem>>, vector<1x14x32xbf16>
    %34 = vector.shape_cast %33 : vector<1x14x32xbf16> to vector<14x32xbf16>
    %35 = vector.shape_cast %32 : vector<14x32xbf16> to vector<1x14x32xbf16>
    tpu.vector_store %arg4[%c0_17, %c0_18, %c0_19], %35 {strides = array<i32>} : memref<1x14x32xbf16, #tpu.memory_space<vmem>>, vector<1x14x32xbf16>,
    return
  }
  func.func @transform_0(%arg0: i32) -> (i32, i32, i32) {
    %c0_i32 = arith.constant 0 : i32
    %c0_i32_0 = arith.constant 0 : i32
    %c0_i32_1 = arith.constant 0 : i32
    return %arg0, %c0_i32, %c0_i32_0 : i32, i32, i32
  }
  func.func @transform_1(%arg0: i32) -> (i32, i32, i32) {
    %c0_i32 = arith.constant 0 : i32
    %c0_i32_0 = arith.constant 0 : i32
    %c0_i32_1 = arith.constant 0 : i32
    %c0_i32_2 = arith.constant 0 : i32
    return %c0_i32, %c0_i32_0, %c0_i32_1 : i32, i32, i32
  }
  func.func @transform_2(%arg0: i32) -> (i32, i32) {
    %c0_i32 = arith.constant 0 : i32
    %c0_i32_0 = arith.constant 0 : i32
    %c0_i32_1 = arith.constant 0 : i32
    return %c0_i32, %c0_i32_0 : i32, i32
  }
  func.func @transform_3(%arg0: i32) -> (i32, i32, i32) {
    %c0_i32 = arith.constant 0 : i32
    %c0_i32_0 = arith.constant 0 : i32
    %c0_i32_1 = arith.constant 0 : i32
    return %arg0, %c0_i32, %c0_i32_0 : i32, i32, i32
  }
}

</mosaic_0001>

<bundles_post_ra>
// kernel: tpu_custom_call.1
= control target key start
LH: loop header
LB: loop body
LE: loop exit
PB: predicated region body
PF: predicated region fallthrough
CT: control target
= control target key end

     0   :  { %s523_s12 = smov 0   ;;  %s565_s0 = inlined_call_operand.vmem [shape: bf16[2,16,4], index: 0, kind: input, shape index: {}]   ;;  %s566_s1 = inlined_call_operand.vmem [shape: bf16[3,4,32], index: 1, kind: input, shape index: {}]   ;;  %s567_s2 = inlined_call_operand.vmem [shape: f32[1,32], index: 2, kind: input, shape index: {}]   ;;  %s568_s3 = inlined_call_operand.vmem [shape: bf16[2,14,32], index: 3, kind: output, shape index: {}]  }
   0x1 LB: > { %s430_s13 = sadd.s32 4294967295, %s499_s12   ;;  %p434_p0 = scmp.ge.s32.totalorder %s499_s12, 1  ;;  %s499_s12 = sphi %s523_s12, %s13_s12  }
   0x2   : > { %p137_p1 = scmp.lt.s32.totalorder %s499_s12, 3 }
   0x4   : > { %p138_p2 = pnand %p434_p0, %p137_p1 }
   0x5   : > { %v439_v0 = vld [vmem:[%s566_s1 + $0x2] sm:$0x3] (!%p138_p2)  ;;  %vm193_vm0 = vcmask (!%p138_p2), 1041408   ;;  %v174_v1 = vld [vmem:[%s566_s1] sm:$0x3] (!%p138_p2)  ;;  %v501_v2 = vmov (!%p138_p2), 0.0  }
   0x6   : > { %141 = sbr.rel (%p138_p2) target bundleno = 277 (0x115), region = 32  ;;  %460 = vmatprep.subr.bf16.mxu0 (!%p138_p2), %v501_v2  ;;  %v195_v3 = vsel (!%p138_p2), %vm193_vm0, %v439_v0, 0  ;;  %466 = vmatprep.subr.bf16.mxu1 (!%p138_p2), %v501_v2  ;;  %v241_v4 = vsel (!%p138_p2), %vm193_vm0, %v174_v1, 0  ;;  %p161_p3 = scmp.lt.s32.totalorder (!%p138_p2), %s430_s13, 1  ;;  %vm502_vm1 = vmmov (!%p138_p2), 0   ;;  %vm189_vm2 = vcmask (!%p138_p2), 31744  }
   0x7   : > { %461 = vmatpush3.bf16.msra.mxu0 (!%p138_p2), %v195_v3  ;;  %467 = vmatpush3.bf16.msra.mxu1 (!%p138_p2), %v241_v4  ;;  %v443_v8 = vld [vmem:[%s566_s1 + $0x4] sm:$0x3] (!%p138_p2)  ;;  %v445_v24 = vld [vmem:[%s567_s2] ss:$0 sm:$0xff] (!%p138_p2)  ;;  %vm371_vm3 = vcmask (!%p138_p2), 257024   ;;  %vm373_vm4 = vcmask (!%p138_p2), 256000  }
   0x8   : > { %462 = vmatprep.mubr.msk.bf16.mxu0 (!%p138_p2), %vm502_vm1, %v501_v2  ;;  %468 = vmatprep.mubr.msk.bf16.mxu1 (!%p138_p2), %vm502_vm1, %v501_v2  ;;  %v291_v11 = vsel (!%p138_p2), %vm193_vm0, %v443_v8, 0 }
   0x9   : > { %472 = vmatprep.subr.bf16.mxu0 (!%p138_p2), %v501_v2 }
   0xd   : > { %s570_s13 = smov (!%p161_p3, %s430_s13), 1 }
   0xe   : > { %s450_s18 = sshll.u32 %s570_s13, 3 }
   0xf   : > { %s165_s21 = scalar_lea.vmem %s565_s0, %s450_s18  ;;  %s170_s28 = scalar_lea.vmem %s568_s3, %s450_s18 }
  0x10   : > { %v488_v5 = vld [vmem:[%s165_s21] sm:$0xff]  }
  0x11   : > { %v183_v6 = vshrl.u32 %v488_v5, 16  ;;  %v185_v7 = vshll.u32 %v488_v5, 16  ;;  %469 = vmatmul.mubr.msk.bf16.vlgmr.msra.gmra.mrb[0].mxu1 %vm189_vm2, %v488_v5  ;;  %v286_v12 = vrot.slane %v488_v5, 1 }
  0x13   : > { %v187_v9 = vrot.slane %v185_v7, 1 }
  0x15   : > { %v188_v10 = vor.u32 %v187_v9, %v183_v6 }
  0x17   : > { %463 = vmatmul.mubr.msk.bf16.vlgmr.msra.gmra.mrb[0].mxu0 %vm189_vm2, %v188_v10 }
  0x18   : > { %473 = vmatpush3.bf16.msra.mxu0 %v291_v11  ;;  %474 = vmatprep.mubr.msk.bf16.mxu0 %vm502_vm1, %v501_v2 }
  0x1f   : > { %475 = vmatmul.mubr.msk.bf16.vlgmr.msra.gmra.mrb[4].mxu0 %vm189_vm2, %v286_v12 }
  0xe4   : > { %v277_v13 = vpop.f32.mrb[0].mxu1 }
  0xe5   : > { %v470_v14 = vpop.f32.mrb[1].mxu1 }
  0xe6   : > { %v280_v15 = vpop.f32.mrb[2].mxu1 }
  0xe7   : > { %v471_v16 = vpop.f32.mrb[3].mxu1 }
  0xea   : > { %v231_v17 = vpop.f32.mrb[0].mxu0 }
  0xeb   : > { %v278_v18 = vadd.f32 %v277_v13, %v231_v17  ;;  %v464_v19 = vpop.f32.mrb[1].mxu0 }
  0xec   : > { %v234_v20 = vpop.f32.mrb[2].mxu0 }
  0xed   : > { %v281_v21 = vadd.f32 %v280_v15, %v234_v20  ;;  %v465_v22 = vpop.f32.mrb[3].mxu0 }
  0xf2   : > { %v327_v23 = vpop.f32.mrb[4].mxu0 }
  0xf3   : > { %v334_v25 = vadd.f32 %v327_v23, %v278_v18  ;;  %v476_v26 = vpop.f32.mrb[5].mxu0 }
  0xf4   : > { %v330_v27 = vpop.f32.mrb[6].mxu0 }
  0xf5   : > { %v343_v28 = vadd.f32 %v445_v24, %v334_v25  ;;  %v335_v29 = vadd.f32 %v330_v27, %v281_v21  ;;  %v477_v30 = vpop.f32.mrb[7].mxu0 }
  0xf7   : > { %v347_v31 = vmul.f32 0.044715, %v343_v28  ;;  %v344_v32 = vadd.f32 %v445_v24, %v335_v29  ;;  %v345_v43 = vmul.f32 0.5, %v343_v28 }
  0xf9   : > { %v349_v33 = vmul.f32 %v347_v31, %v343_v28  ;;  %v348_v34 = vmul.f32 0.044715, %v344_v32  ;;  %v346_v47 = vmul.f32 0.5, %v344_v32 }
  0xfb   : > { %v351_v35 = vmul.f32 %v349_v33, %v343_v28  ;;  %v350_v36 = vmul.f32 %v348_v34, %v344_v32 }
  0xfd   : > { %v353_v37 = vadd.f32 %v351_v35, %v343_v28  ;;  %v352_v38 = vmul.f32 %v350_v36, %v344_v32 }
  0xff   : > { %v355_v39 = vmul.f32 0.7978846, %v353_v37  ;;  %v354_v40 = vadd.f32 %v352_v38, %v344_v32 }
 0x101   : > { %489 = vtanh.f32 %v355_v39  ;;  %v356_v41 = vmul.f32 0.7978846, %v354_v40 }
 0x103   : > { %491 = vtanh.f32 %v356_v41 }
 0x10b   : > { %v490_v42 = vpop.eup %489 }
 0x10c   : > { %v359_v44 = vadd.f32 1.0, %v490_v42 }
 0x10d   : > { %v492_v45 = vpop.eup %491 }
 0x10e   : > { %v361_v46 = vmul.f32 %v359_v44, %v345_v43  ;;  %v360_v48 = vadd.f32 1.0, %v492_v45 }
 0x110   : > { %v452_v49 = vpack.c.bf16 %v361_v46, %v361_v46  ;;  %v362_v50 = vmul.f32 %v360_v48, %v346_v47 }
 0x112   : > { %372 = vst.msk [vmem:[%s170_s28] sm:$0xf] %vm371_vm3, %v452_v49  ;;  %v453_v51 = vpack.c.bf16 %v362_v50, %v362_v50 }
 0x114   : > { %374 = vst.msk [vmem:[%s170_s28 + $0x4] sm:$0x7] %vm373_vm4, %v453_v51 }
 0x115 PF: > { %s13_s12 = sadd.s32 1, %s499_s12  }
 0x116   : > { %p10_p4 = scmp.ge.s32.totalorder %s13_s12, 4  }
 0x118   :  { %12 = sbr.rel (!%p10_p4) target bundleno = 1 (0x1), region = 64 }

</bundles_post_ra>
